<compile_context>
chip_gen: v7x
topology: tpu7x:2x2x1
jax: 0.10.0
libtpu: 0.0.40
codegen_flags: <defaults>
</compile_context>

<pallas_src>
import jax
import jax.numpy as jnp
from jax.experimental import pallas as pl
from jax.experimental.pallas import tpu as pltpu

LANES = 128


def regression_kernel(params_ref, x_ref, o_ref):
    # params_ref: SMEM f32[p + 2] = [w_0, ..., w_{p-1}, bias, factor]
    # x_ref:      VMEM f32[p, rt, 128]  (feature-major, N lane-dense slabs)
    # o_ref:      VMEM f32[rt, 128]
    p = x_ref.shape[0]
    x0 = x_ref[0]                      # (rt, 128)
    x1 = x_ref[1]                      # (rt, 128)
    b = params_ref[p]
    f = params_ref[p + 1]
    # Pure VPU: two scalar*vector muls, interaction term, bias.
    acc = params_ref[0] * x0 + params_ref[1] * x1 + f * (x0 * x1) + b
    for j in range(2, p):              # static unroll; p == 2 in this model
        acc = acc + params_ref[j] * x_ref[j]
    o_ref[...] = acc.astype(o_ref.dtype)


def regression_forward(x, weight, bias, factor, *, row_tile=512):
    """x: (N, p) f32, weight: (1, p) f32, bias: () f32, factor: () f32 -> (N, 1) f32.

    row_tile = sublane rows (of 128 lanes) per grid step; must be a multiple of 8
    when tiling (512 rows => 512*128 elems/feature ~ 256 KiB/feature per block).
    """
    N, p = x.shape
    dtype = x.dtype

    R = pl.cdiv(N, LANES)                       # rows of 128 lanes needed
    rt = R if R <= row_tile else row_tile       # block row count (full dim if small)
    Rp = pl.cdiv(R, rt) * rt                    # padded row count (multiple of rt)
    Np = Rp * LANES                             # padded N

    # Layout plumbing: pad N and lay x out feature-major, lane-dense.
    if Np != N:
        x_pad = jnp.zeros((Np, p), dtype).at[:N].set(x)
    else:
        x_pad = x
    xt = x_pad.T.reshape(p, Rp, LANES)          # (p, Rp, 128)

    # Scalars go to SMEM: [w_0 .. w_{p-1}, bias, factor]
    params = jnp.concatenate([
        weight.astype(jnp.float32).reshape(-1),
        jnp.reshape(bias, (1,)).astype(jnp.float32),
        jnp.reshape(factor, (1,)).astype(jnp.float32),
    ])

    grid = (Rp // rt,)
    out2d = pl.pallas_call(
        regression_kernel,
        out_shape=jax.ShapeDtypeStruct((Rp, LANES), dtype),
        grid=grid,
        in_specs=[
            pl.BlockSpec(memory_space=pltpu.MemorySpace.SMEM),      # params (whole)
            pl.BlockSpec((p, rt, LANES), lambda i: (0, i, 0)),      # x slabs
        ],
        out_specs=pl.BlockSpec((rt, LANES), lambda i: (i, 0)),
        compiler_params=pltpu.CompilerParams(
            dimension_semantics=("parallel",)),
    )(params, xt)

    return out2d.reshape(Np, 1)[:N]


if __name__ == "__main__":
    p = 2
    key = jax.random.PRNGKey(0)
    kx, kw, kb, kx2 = jax.random.split(key, 4)

    # Deterministic synthetic parameters (shapes match nn.Linear(p, 1) + scalar factor).
    weight = jax.random.normal(kw, (1, p), dtype=jnp.float32) * 0.5
    bias = jax.random.normal(kb, (), dtype=jnp.float32) * 0.1
    factor = jnp.float32(1.0)

    def ref_forward(x):
        return x @ weight.T + bias + (factor * x[:, 0] * x[:, 1])[:, None]

    # Small case (module-scale input).
    N1 = 8
    x1 = jax.random.normal(kx, (N1, p), dtype=jnp.float32)
    out1 = jax.block_until_ready(regression_forward(x1, weight, bias, factor))
    assert out1.shape == (N1, 1)
    assert jnp.allclose(out1, ref_forward(x1), atol=1e-5, rtol=1e-5)

    # Larger case exercising N-padding and a multi-step pipelined grid (2 steps).
    N2 = 2000
    x2 = jax.random.normal(kx2, (N2, p), dtype=jnp.float32)
    out2 = jax.block_until_ready(
        regression_forward(x2, weight, bias, factor, row_tile=8))
    assert out2.shape == (N2, 1)
    assert jnp.allclose(out2, ref_forward(x2), atol=1e-5, rtol=1e-5)

    print("KERNEL_OK")
</pallas_src>

<mosaic_0001>
module attributes {stable_mosaic.version = 11 : i64} {
  func.func @regression_kernel(%arg0: i32, %arg1: memref<4xf32, #tpu.memory_space<smem>>, %arg2: memref<2x1x128xf32, #tpu.memory_space<vmem>>, %arg3: memref<1x128xf32, #tpu.memory_space<vmem>>) attributes {dimension_semantics = [#tpu.dimension_semantics<parallel>], iteration_bounds = array<i64: 1>, scalar_prefetch = 0 : i64, scratch_operands = 0 : i64, tpu.core_type = #tpu.core_type<tc>, window_params = [{transform_indices = @transform_0, window_bounds = array<i64: 4>}, {transform_indices = @transform_1, window_bounds = array<i64: 2, 1, 128>}, {transform_indices = @transform_2, window_bounds = array<i64: 1, 128>}]} {
    %c0 = arith.constant 0 : index
    %c0_0 = arith.constant 0 : index
    %c0_1 = arith.constant 0 : index
    %0 = vector.load %arg2[%c0, %c0_0, %c0_1] : memref<2x1x128xf32, #tpu.memory_space<vmem>>, vector<1x1x128xf32>
    %1 = vector.shape_cast %0 : vector<1x1x128xf32> to vector<1x128xf32>
    %c1 = arith.constant 1 : index
    %c0_2 = arith.constant 0 : index
    %c0_3 = arith.constant 0 : index
    %2 = vector.load %arg2[%c1, %c0_2, %c0_3] : memref<2x1x128xf32, #tpu.memory_space<vmem>>, vector<1x1x128xf32>
    %3 = vector.shape_cast %2 : vector<1x1x128xf32> to vector<1x128xf32>
    %c2 = arith.constant 2 : index
    %4 = memref.load %arg1[%c2] : memref<4xf32, #tpu.memory_space<smem>>
    %c3 = arith.constant 3 : index
    %5 = memref.load %arg1[%c3] : memref<4xf32, #tpu.memory_space<smem>>
    %c0_4 = arith.constant 0 : index
    %6 = memref.load %arg1[%c0_4] : memref<4xf32, #tpu.memory_space<smem>>
    %7 = vector.broadcast %6 : f32 to vector<1x128xf32>
    %8 = arith.mulf %7, %1 : vector<1x128xf32>
    %c1_5 = arith.constant 1 : index
    %9 = memref.load %arg1[%c1_5] : memref<4xf32, #tpu.memory_space<smem>>
    %10 = vector.broadcast %9 : f32 to vector<1x128xf32>
    %11 = arith.mulf %10, %3 : vector<1x128xf32>
    %12 = arith.addf %8, %11 : vector<1x128xf32>
    %13 = arith.mulf %1, %3 : vector<1x128xf32>
    %14 = vector.broadcast %5 : f32 to vector<1x128xf32>
    %15 = arith.mulf %14, %13 : vector<1x128xf32>
    %16 = arith.addf %12, %15 : vector<1x128xf32>
    %17 = vector.broadcast %4 : f32 to vector<1x128xf32>
    %18 = arith.addf %16, %17 : vector<1x128xf32>
    %c0_6 = arith.constant 0 : index
    %c0_7 = arith.constant 0 : index
    %19 = vector.load %arg3[%c0_6, %c0_7] : memref<1x128xf32, #tpu.memory_space<vmem>>, vector<1x128xf32>
    tpu.vector_store %arg3[%c0_6, %c0_7], %18 {strides = array<i32>} : memref<1x128xf32, #tpu.memory_space<vmem>>, vector<1x128xf32>,
    return
  }
  func.func @transform_0(%arg0: i32) -> i32 {
    %c0_i32 = arith.constant 0 : i32
    %c0_i32_0 = arith.constant 0 : i32
    return %c0_i32 : i32
  }
  func.func @transform_1(%arg0: i32) -> (i32, i32, i32) {
    %c0_i32 = arith.constant 0 : i32
    %c0_i32_0 = arith.constant 0 : i32
    %c0_i32_1 = arith.constant 0 : i32
    return %c0_i32, %arg0, %c0_i32_0 : i32, i32, i32
  }
  func.func @transform_2(%arg0: i32) -> (i32, i32) {
    %c0_i32 = arith.constant 0 : i32
    %c0_i32_0 = arith.constant 0 : i32
    return %arg0, %c0_i32 : i32, i32
  }
}

</mosaic_0001>

<bundles_post_ra>
// kernel: tpu_custom_call.1
= control target key start
LH: loop header
LB: loop body
LE: loop exit
PB: predicated region body
PF: predicated region fallthrough
CT: control target
= control target key end

     0   :  { %7 = vsyncpa [#allocation4], 0  ;;  %s146_s0 = inlined_call_operand.hbm [shape: f32[4], index: 0, kind: input, shape index: {}]   ;;  %s147_s1 = inlined_call_operand.vmem [shape: f32[2,1,128], index: 1, kind: input, shape index: {}]   ;;  %s148_s2 = inlined_call_operand.hbm [shape: f32[1,128], index: 2, kind: output, shape index: {}]  }
   0x1   :  { %8 = vsyncpa [#allocation3], 0  ;;  %s63_s11 = scalar_lea.hbm %s146_s0, 16 }
   0x2   :  { %p64_p0 = scmp.ne.s32.totalorder %s146_s0, %s63_s11  ;;  %p67_p1 = scmp.lt.u32.totalorder %s63_s11, %s146_s0 }
   0x4   :  { %p69_p2 = pnand %p67_p1, %p64_p0 }
   0x6   :  { %72 = shalt.err (!%p69_p2)
}
   0x7   :  { %s99_s16 = smov [#allocation2]  }
   0x8   :  { %16 = dma.hbm_to_smem %s146_s0, 16, %s99_s16, [#allocation4]  }
   0x9   :  { %95 = dma.done.wait [#allocation4], 16  }
   0xa   :  { %96 = vsyncadd [#allocation4], 4294967280 }
   0xb   :  { %22 = sfence }
   0xc   :  { %s59_s19 = sld [smem:[#allocation2 + $0x3]]  ;;  %s28_s20 = sld [smem:[#allocation2]]  ;;  %v23_v0 = vld [vmem:[%s147_s1] sm:$0x1]  ;;  %v57_v1 = vld [vmem:[%s147_s1 + $0x1] sm:$0x1] }
   0xd   :  { %s60_s25 = sld [smem:[#allocation2 + $0x1]]  ;;  %s58_s26 = sld [smem:[#allocation2 + $0x2]]  ;;  %v35_v2 = vmul.f32 %v57_v1, %v23_v0 }
   0xe   :  { %s100_s0 = smov [#allocation5]  }
   0xf   :  { %s48_s27 = sshll.u32 %s100_s0, 4  ;;  %s49_s27 = int_to_ptr.vmem [resolvable:$true] %s48_s27 }
  0x10   :  { %s73_s28 = scalar_lea.vmem %s49_s27, 16  ;;  %s77_s1 = scalar_lea.vmem %s49_s27, 32 }
  0x11   :  { %p74_p3 = scmp.ne.s32.totalorder %s49_s27, %s73_s28  ;;  %p78_p4 = scmp.lt.s32.totalorder %s49_s27, %s49_s27 }
  0x12   :  { %v29_v3 = vstv %s28_s20  ;;  %v36_v4 = vstv %s59_s19  ;;  %p79_p5 = scmp.lt.s32.totalorder %s77_s1, %s73_s28 }
  0x13   :  { %v30_v5 = vmul.f32 %v29_v3, %v23_v0  ;;  %v32_v6 = vstv %s60_s25  ;;  %v37_v8 = vmul.f32 %v36_v4, %v35_v2  ;;  %v39_v10 = vstv %s58_s26 }
  0x14   :  { %v33_v7 = vmul.f32 %v57_v1, %v32_v6  ;;  %p80_p6 = por %p79_p5, %p78_p4 }
  0x16   :  { %v34_v9 = vadd.f32 %v33_v7, %v30_v5  ;;  %p81_p7 = pnand %p80_p6, %p74_p3 }
  0x18   :  { %v38_v11 = vadd.f32 %v37_v8, %v34_v9 }
  0x1a   :  { %v40_v12 = vadd.f32 %v39_v10, %v38_v11 }
  0x1c   :  { %41 = vst [vmem:[#allocation5] sm:$0x1] %v40_v12 }
  0x1d   :  { %84 = shalt.err (!%p81_p7)
}
  0x1e   :  { %s85_s3 = scalar_lea.hbm %s148_s2, 16 }
  0x1f   :  { %p86_p8 = scmp.ne.s32.totalorder %s148_s2, %s85_s3  ;;  %p89_p9 = scmp.lt.u32.totalorder %s85_s3, %s148_s2 }
  0x21   :  { %p91_p10 = pnand %p89_p9, %p86_p8 }
  0x23   :  { %94 = shalt.err (!%p91_p10)
}
  0x24   :  { %51 = dma.vmem_to_hbm [thread:$0]  %s49_s27, 16, %s148_s2, [#allocation3]  }
  0x25   :  { %97 = dma.done.wait [#allocation3], 16  }
  0x26   :  { %98 = vsyncadd [#allocation3], 4294967280 }
  0x27   :  { %55 = vsyncpa [#allocation3], 1 }
  0x28   :  { %56 = vsyncpa [#allocation4], 1 }

</bundles_post_ra>
